<compile_context>
chip_gen: v5e
topology: v5e:2x2
jax: 0.10.0
libtpu: 0.0.40
codegen_flags: <defaults>
</compile_context>

<pallas_src>
import functools

import jax
import jax.numpy as jnp
from jax.experimental import pallas as pl
from jax.experimental.pallas import tpu as pltpu


def _round_up(v, m):
    return ((v + m - 1) // m) * m


def _linear_kernel(x_ref, w_ref, b_ref, o_ref):
    # x_ref: (tm, K) f32  -> cast to bf16 on the VPU (hidden under the DMA)
    # w_ref: (K, Np) bf16 -> pre-transposed, VMEM-resident
    # b_ref: (1, Np) f32
    # o_ref: (tm, Np) bf16
    # MXU matmul with f32 accumulate; bias add + downcast folded into the store.
    x_bf = x_ref[...].astype(jnp.bfloat16)
    acc = jnp.dot(x_bf, w_ref[...], preferred_element_type=jnp.float32)
    o_ref[...] = (acc + b_ref[...]).astype(o_ref.dtype)


def prepare_linear_params(weight, bias):
    """One-time (init-time) parameter prep.

    weight: PyTorch-style (out_dim, in_dim); bias: (out_dim,).
    Returns (w_t, b_pad, out_dim, out_pad) with w_t = W^T zero-padded to a
    lane-dense width and cast to bf16, so the per-call forward never touches
    the raw weight again.
    """
    out_dim, in_dim = weight.shape
    # 128 lanes is enough for narrow heads; for wider layers pad to 256 so the
    # v6e/v7x 256-wide MXU is fully fed (v5e's 128-wide MXU is fine either way).
    out_pad = 128 if out_dim <= 128 else _round_up(out_dim, 256)
    w_t = jnp.zeros((in_dim, out_pad), dtype=jnp.bfloat16)
    w_t = w_t.at[:, :out_dim].set(weight.T.astype(jnp.bfloat16))
    b_pad = jnp.zeros((1, out_pad), dtype=jnp.float32)
    b_pad = b_pad.at[:, :out_dim].set(bias.astype(jnp.float32))
    return w_t, b_pad, out_dim, out_pad


def _choose_tm(n, in_dim, out_pad, tm):
    """Row-tile selection: 16-aligned, VMEM-guarded, >=2 grid steps for v7x."""
    if n <= 8:
        return max(n, 1)  # single full-extent block (legal even if not 8-aligned)
    # VMEM guardrail: keep double-buffered x(f32) + out(bf16) tiles under ~8 MiB
    # (v7x has only 32 MiB scoped-VMEM default / 64 MiB physical).
    bytes_per_row = in_dim * 4 + out_pad * 2
    row_cap = max(16, (((8 << 20) // (2 * bytes_per_row)) // 16) * 16)
    tm = min(tm, row_cap)
    align = 16 if n >= 16 else 8  # bf16 packs 2 rows per sublane -> prefer 16
    n_al = _round_up(n, align)
    # Cap so the row grid has >= 2 steps whenever there is more than one tile
    # of work, letting the "parallel" axis shard across v7x's 2 TensorCores.
    half = _round_up(pl.cdiv(n_al, 2), align)
    return max(align, min(tm, half))


@functools.partial(jax.jit, static_argnames=("in_dim", "out_dim", "tm"))
def net_forward(x, w_t, b_pad, *, in_dim, out_dim, tm=2048):
    """Pallas implementation of Net.forward: x.view(-1, in_dim) @ W.T + b."""
    x2d = x.reshape(-1, in_dim)            # same as torch .view(-1, in_dim)
    n = x2d.shape[0]
    out_pad = w_t.shape[1]

    tm_eff = _choose_tm(n, in_dim, out_pad, tm)
    grid = (pl.cdiv(n, tm_eff),)

    out_full = pl.pallas_call(
        _linear_kernel,
        out_shape=jax.ShapeDtypeStruct((n, out_pad), jnp.bfloat16),
        grid=grid,
        in_specs=[
            pl.BlockSpec((tm_eff, in_dim), lambda i: (i, 0)),    # x: streamed over rows
            pl.BlockSpec((in_dim, out_pad), lambda i: (0, 0)),   # W^T: VMEM-resident
            pl.BlockSpec((1, out_pad), lambda i: (0, 0)),        # bias: VMEM-resident
        ],
        out_specs=pl.BlockSpec((tm_eff, out_pad), lambda i: (i, 0)),
        compiler_params=pltpu.CompilerParams(
            dimension_semantics=("parallel",),  # rows independent -> megacore shard
        ),
    )(x2d, w_t, b_pad)

    # Slice padded lanes back to out_dim and restore the module's f32 output
    # dtype (tiny: n * out_dim elements; fuses under jit).
    return out_full[:, :out_dim].astype(jnp.float32)


if __name__ == "__main__":
    # Small shapes consistent with the module: Net(in_dim=32, out_dim=2).
    in_dim = 32
    out_dim = 2

    key = jax.random.PRNGKey(0)
    kx, kw = jax.random.split(key)

    # Deterministic params mimicking weight_init(mean=0, std=0.02); bias zeroed.
    weight = 0.02 * jax.random.normal(kw, (out_dim, in_dim), dtype=jnp.float32)
    bias = jnp.zeros((out_dim,), dtype=jnp.float32)

    # One-time parameter prep (hoisted out of the forward pass).
    w_t, b_pad, out_dim_chk, out_pad = prepare_linear_params(weight, bias)
    assert out_dim_chk == out_dim

    # Input whose flatten yields in_dim columns: (2, 4, 32) -> view(-1, 32) = (8, 32).
    x = jax.random.normal(kx, (2, 4, in_dim), dtype=jnp.float32)

    out = net_forward(x, w_t, b_pad, in_dim=in_dim, out_dim=out_dim)
    out = jax.block_until_ready(out)

    # Correctness check against plain-JAX f32 reference (bf16 MXU inputs and
    # bf16 output store, f32 accumulate -> loose-ish tolerance).
    ref = x.reshape(-1, in_dim) @ weight.T + bias
    assert out.shape == ref.shape, (out.shape, ref.shape)
    assert jnp.allclose(out, ref, atol=1e-2, rtol=1e-2), (
        f"max abs err {jnp.max(jnp.abs(out - ref))}"
    )

    print("KERNEL_OK")
</pallas_src>

<mosaic_0001>
module attributes {stable_mosaic.version = 11 : i64} {
  func.func @_linear_kernel(%arg0: i32, %arg1: memref<8x32xf32, #tpu.memory_space<vmem>>, %arg2: memref<32x128xbf16, #tpu.memory_space<vmem>>, %arg3: memref<1x128xf32, #tpu.memory_space<vmem>>, %arg4: memref<8x128xbf16, #tpu.memory_space<vmem>>) attributes {dimension_semantics = [#tpu.dimension_semantics<parallel>], iteration_bounds = array<i64: 1>, scalar_prefetch = 0 : i64, scratch_operands = 0 : i64, tpu.core_type = #tpu.core_type<tc>, window_params = [{transform_indices = @transform_0, window_bounds = array<i64: 8, 32>}, {pipeline_mode = #tpu.pipeline_mode<synchronous>, transform_indices = @transform_1, window_bounds = array<i64: 32, 128>}, {pipeline_mode = #tpu.pipeline_mode<synchronous>, transform_indices = @transform_2, window_bounds = array<i64: 1, 128>}, {transform_indices = @transform_3, window_bounds = array<i64: 8, 128>}]} {
    %c0 = arith.constant 0 : index
    %c0_0 = arith.constant 0 : index
    %0 = vector.load %arg1[%c0, %c0_0] : memref<8x32xf32, #tpu.memory_space<vmem>>, vector<8x32xf32>
    %1 = arith.truncf %0 : vector<8x32xf32> to vector<8x32xbf16>
    %c0_1 = arith.constant 0 : index
    %c0_2 = arith.constant 0 : index
    %2 = vector.load %arg2[%c0_1, %c0_2] : memref<32x128xbf16, #tpu.memory_space<vmem>>, vector<32x128xbf16>
    %cst = arith.constant dense<0.000000e+00> : vector<8x128xf32>
    %3 = tpu.matmul %1, %2, %cst {dimension_numbers = #tpu.dot_dimension_numbers<[1], [0], [0], [1], [0, 0, 1, 1], [], []>} : vector<8x32xbf16>, vector<32x128xbf16>, vector<8x128xf32> -> vector<8x128xf32>
    %c0_3 = arith.constant 0 : index
    %c0_4 = arith.constant 0 : index
    %4 = vector.load %arg3[%c0_3, %c0_4] : memref<1x128xf32, #tpu.memory_space<vmem>>, vector<1x128xf32>
    %5 = vector.broadcast %4 : vector<1x128xf32> to vector<8x128xf32>
    %6 = arith.addf %3, %5 : vector<8x128xf32>
    %7 = arith.truncf %6 : vector<8x128xf32> to vector<8x128xbf16>
    %c0_5 = arith.constant 0 : index
    %c0_6 = arith.constant 0 : index
    %8 = vector.load %arg4[%c0_5, %c0_6] : memref<8x128xbf16, #tpu.memory_space<vmem>>, vector<8x128xbf16>
    tpu.vector_store %arg4[%c0_5, %c0_6], %7 {strides = array<i32>} : memref<8x128xbf16, #tpu.memory_space<vmem>>, vector<8x128xbf16>,
    return
  }
  func.func @transform_0(%arg0: i32) -> (i32, i32) {
    %c0_i32 = arith.constant 0 : i32
    %c0_i32_0 = arith.constant 0 : i32
    return %arg0, %c0_i32 : i32, i32
  }
  func.func @transform_1(%arg0: i32) -> (i32, i32) {
    %c0_i32 = arith.constant 0 : i32
    %c0_i32_0 = arith.constant 0 : i32
    %c0_i32_1 = arith.constant 0 : i32
    return %c0_i32, %c0_i32_0 : i32, i32
  }
  func.func @transform_2(%arg0: i32) -> (i32, i32) {
    %c0_i32 = arith.constant 0 : i32
    %c0_i32_0 = arith.constant 0 : i32
    %c0_i32_1 = arith.constant 0 : i32
    return %c0_i32, %c0_i32_0 : i32, i32
  }
  func.func @transform_3(%arg0: i32) -> (i32, i32) {
    %c0_i32 = arith.constant 0 : i32
    %c0_i32_0 = arith.constant 0 : i32
    return %arg0, %c0_i32 : i32, i32
  }
}

</mosaic_0001>

<bundles_post_ra>
// kernel: net_forward.1
= control target key start
LH: loop header
LB: loop body
LE: loop exit
PB: predicated region body
PF: predicated region fallthrough
CT: control target
= control target key end

     0   :  { %8 = vsyncpa [#allocation3], 0  ;;  %s196_s0 = inlined_call_operand.hbm [shape: f32[8,32], index: 0, kind: input, shape index: {}]   ;;  %s197_s1 = inlined_call_operand.hbm [shape: bf16[32,128], index: 1, kind: input, shape index: {}]   ;;  %s198_s2 = inlined_call_operand.vmem [shape: f32[1,128], index: 2, kind: input, shape index: {}]   ;;  %s199_s3 = inlined_call_operand.vmem [shape: bf16[8,128], index: 3, kind: output, shape index: {}]  }
   0x1   :  { %s15_s14 = sshll.u32 %s196_s0, 4  ;;  %s16_s14 = int_to_ptr.hbm [resolvable:$true] %s15_s14 }
   0x2   :  { %9 = vsyncpa [#allocation5], 0  ;;  %s160_s15 = smov [#allocation2]   ;;  %s25_s19 = sshll.u32 %s197_s1, 4  ;;  %s26_s19 = int_to_ptr.hbm [resolvable:$true] %s25_s19 }
   0x3   :  { %s17_s16 = sshll.u32 %s160_s15, 4  ;;  %s161_s20 = smov [#allocation4]   ;;  %s18_s16 = int_to_ptr.vmem [resolvable:$true] %s17_s16 }
   0x4   :  { %20 = dma.hbm_to_vmem [thread:$0]  %s16_s14, 128, %s18_s16, [#allocation3]  }
   0x5   :  { %s27_s21 = sshll.u32 %s161_s20, 4  ;;  %s162_s22 = smov 64   ;;  %s28_s21 = int_to_ptr.vmem [resolvable:$true] %s27_s21 }
   0x6   :  { %s163_s23 = smov 4  }
   0x7   :  { %33 = dma.hbm_to_vmem [thread:$0]  %s26_s19, 256, %s28_s21, [#allocation5], %s162_s22, %s162_s22, %s163_s23  }
   0x8   :  { %156 = dma.done.wait [#allocation3], 128  }
   0x9   :  { %157 = vsyncadd [#allocation3], 4294967168 }
   0xa   :  { %158 = dma.done.wait [#allocation5], 256  }
   0xb   :  { %159 = vsyncadd [#allocation5], 4294967040  ;;  %v102_v0 = vld [vmem:[#allocation4 + $0x8] sm:$0xff]  ;;  %v101_v1 = vld [vmem:[#allocation4] sm:$0xff]  ;;  %vm67_vm0 = vcmask 261120  }
   0xc   :  { %77 = vmatpush.bf16.msra.mxu0 %v102_v0  ;;  %v45_v2 = vld [vmem:[#allocation2] sm:$0xff] }
   0xd   :  { %v46_v3 = vpack.c.bf16 %v45_v2, %v45_v2  ;;  %v107_v4 = vld [vmem:[%s198_s2] ss:$0 sm:$0xff] }
  0x10   :  { %78 = vmatpush.bf16.msra.mxu0 %v101_v1 }
  0x13   :  { %100 = vmatmul.msk.bf16.vlgmr.msra.gmra.mxu0 %vm67_vm0, %v46_v3 }
  0x90   :  { %v80_v5 = vpop.f32.mrf.mxu0 }
  0x91   :  { %v81_v6 = vadd.f32 %v107_v4, %v80_v5 }
  0x93   :  { %v84_v7 = vpack.c.bf16 %v81_v6, %v81_v6 }
  0x95   :  { %85 = vst [vmem:[%s199_s3] sm:$0xf] %v84_v7 }
  0x98   :  { %v82_v8 = vpop.f32.mrf.mxu0 }
  0x99   :  { %90 = vsyncpa [#allocation3], 1 }
  0x9a   :  { %91 = vsyncpa [#allocation5], 1 }

</bundles_post_ra>
